<compile_context>
chip_gen: v6e
topology: v6e:2x2x1
jax: 0.10.0
libtpu: 0.0.40
codegen_flags: <defaults>
</compile_context>

<pallas_src>
import math
from functools import partial

import jax
import jax.numpy as jnp
from jax.experimental import pallas as pl
from jax.experimental.pallas import tpu as pltpu

# ----------------------------- config (small synthetic CLIP text tower) ------
VOCAB_SIZE = 512     # token vocab
CONTEXT = 16         # context length S
WIDTH = 64           # transformer width
HEADS = 4
LAYERS = 2
EMBED_DIM = 64       # output embedding dim D

# tile sizes (lane-dense, MXU-aligned); demo shapes collapse the grid to (1, 1)
TN_CLS = 256         # rows of feat per tile
TC_CLS = 512         # categories per tile (output lane axis)
TB_HEAD = 128        # rows per tile in the text head

VMEM = pltpu.MemorySpace.VMEM


def _round_up(x, m):
    return ((x + m - 1) // m) * m


# ----------------------------- Pallas kernels --------------------------------
def _classify_kernel(feat_ref, w_ref, out_ref):
    """logits_tile = normalize_f32(feat_tile) @ W_tile, W pre-scaled by exp(logit_scale).

    feat_ref: (tn, Dp) f32, zero-padded along D -> sum-of-squares is exact.
    w_ref:    (Dp, tc) bf16, = (exp(logit_scale) * text_feat).T  zero-padded.
    """
    feat = feat_ref[...]                                            # f32
    inv = jax.lax.rsqrt(jnp.sum(feat * feat, axis=-1, keepdims=True))
    fn = (feat * inv).astype(jnp.bfloat16)                          # norm in f32, MXU in bf16
    out_ref[...] = jnp.dot(fn, w_ref[...], preferred_element_type=jnp.float32)
    # NOTE: base CLIP has no `logit_bias`, so `hasattr(self, 'logit_bias')` is False.


def classify_call(feat_padded, w_dc_padded, *, tn=TN_CLS, tc=TC_CLS):
    """feat_padded: (Np, Dp) f32; w_dc_padded: (Dp, Cp) bf16; Np % tn == 0, Cp % tc == 0."""
    np_, dp = feat_padded.shape
    cp = w_dc_padded.shape[1]
    return pl.pallas_call(
        _classify_kernel,
        out_shape=jax.ShapeDtypeStruct((np_, cp), jnp.float32),
        grid=(np_ // tn, cp // tc),
        in_specs=[pl.BlockSpec((tn, dp), lambda i, j: (i, 0)),
                  pl.BlockSpec((dp, tc), lambda i, j: (0, j))],
        out_specs=pl.BlockSpec((tn, tc), lambda i, j: (i, j)),
        compiler_params=pltpu.CompilerParams(
            dimension_semantics=("parallel", "parallel")),
    )(feat_padded, w_dc_padded)


def _text_head_kernel(x_ref, g_ref, b_ref, proj_ref, out_ref, *, normalize):
    """ln_final(x_eot) @ text_projection (+ optional L2 normalize), per (tb, W) tile."""
    x = x_ref[...]                                                  # (tb, W) f32
    mu = jnp.mean(x, axis=-1, keepdims=True)
    var = jnp.mean((x - mu) ** 2, axis=-1, keepdims=True)
    xn = (x - mu) * jax.lax.rsqrt(var + 1e-5)
    xn = xn * g_ref[...] + b_ref[...]                               # g/b: (1, W)
    y = jnp.dot(xn, proj_ref[...], preferred_element_type=jnp.float32)  # (tb, Dout_p)
    if normalize:
        # F.normalize: x / max(||x||, eps); padded output columns are zero -> norm exact.
        y = y * jax.lax.rsqrt(jnp.maximum(jnp.sum(y * y, axis=-1, keepdims=True), 1e-24))
    out_ref[...] = y


def text_head_call(x_eot, gamma, beta, proj, *, normalize=True, tb=TB_HEAD):
    """x_eot: (B, W) — the EOT-token rows, gathered BEFORE the kernel."""
    b, w = x_eot.shape
    dout = proj.shape[1]
    bp = _round_up(max(b, 1), tb)
    dout_p = _round_up(dout, 128)                                   # lane-dense output
    xp = jnp.pad(x_eot.astype(jnp.float32), ((0, bp - b), (0, 0)))
    projp = jnp.pad(proj.astype(jnp.float32), ((0, 0), (0, dout_p - dout)))
    out = pl.pallas_call(
        partial(_text_head_kernel, normalize=normalize),
        out_shape=jax.ShapeDtypeStruct((bp, dout_p), jnp.float32),
        grid=(bp // tb,),
        in_specs=[pl.BlockSpec((tb, w), lambda i: (i, 0)),
                  pl.BlockSpec((1, w), lambda i: (0, 0)),
                  pl.BlockSpec((1, w), lambda i: (0, 0)),
                  pl.BlockSpec((w, dout_p), lambda i: (0, 0))],
        out_specs=pl.BlockSpec((tb, dout_p), lambda i: (i, 0)),
        compiler_params=pltpu.CompilerParams(dimension_semantics=("parallel",)),
    )(xp, gamma.reshape(1, w), beta.reshape(1, w), projp)
    return out[:b, :dout]


def _template_mean_kernel(stk_ref, out_ref):
    """mean over prompt templates then renormalize rows (construction-time only)."""
    m = jnp.mean(stk_ref[...], axis=0)                              # (C, D)
    out_ref[...] = m * jax.lax.rsqrt(jnp.sum(m * m, axis=-1, keepdims=True))


def template_mean_call(stacked):
    _, c, d = stacked.shape
    return pl.pallas_call(
        _template_mean_kernel,
        out_shape=jax.ShapeDtypeStruct((c, d), jnp.float32),
        in_specs=[pl.BlockSpec(memory_space=VMEM)],
        out_specs=pl.BlockSpec(memory_space=VMEM),
    )(stacked)


# ----------------------------- plain-JAX glue (construction-time) ------------
def _layer_norm(x, g, b, eps=1e-5):
    mu = jnp.mean(x, -1, keepdims=True)
    var = jnp.mean((x - mu) ** 2, -1, keepdims=True)
    return (x - mu) * jax.lax.rsqrt(var + eps) * g + b


def _attention(x, p, mask, heads):
    b, s, d = x.shape
    hd = d // heads
    qkv = x @ p["w_qkv"] + p["b_qkv"]
    q, k, v = jnp.split(qkv, 3, axis=-1)
    def sh(t):
        return t.reshape(b, s, heads, hd).transpose(0, 2, 1, 3)
    q, k, v = sh(q), sh(k), sh(v)
    scores = jnp.einsum("bhqd,bhkd->bhqk", q, k) / math.sqrt(hd) + mask
    attn = jax.nn.softmax(scores, axis=-1)
    o = jnp.einsum("bhqk,bhkd->bhqd", attn, v).transpose(0, 2, 1, 3).reshape(b, s, d)
    return o @ p["w_out"] + p["b_out"]


def _mlp(x, p):
    h = jax.nn.gelu(x @ p["w_fc"] + p["b_fc"])
    return h @ p["w_proj"] + p["b_proj"]


def _block(x, p, mask, heads):
    # pre-LN residual block (CLIP ResidualAttentionBlock)
    x = x + _attention(_layer_norm(x, p["ln1_g"], p["ln1_b"]), p, mask, heads)
    x = x + _mlp(_layer_norm(x, p["ln2_g"], p["ln2_b"]), p)
    return x


def _init_params(key):
    ks = jax.random.split(key, 3 + LAYERS)
    params = {
        "token_embedding": 0.02 * jax.random.normal(ks[0], (VOCAB_SIZE, WIDTH), jnp.float32),
        "positional_embedding": 0.01 * jax.random.normal(ks[1], (CONTEXT, WIDTH), jnp.float32),
        "ln_final_g": jnp.ones((WIDTH,), jnp.float32),
        "ln_final_b": jnp.zeros((WIDTH,), jnp.float32),
        "text_projection": (WIDTH ** -0.5)
        * jax.random.normal(ks[2], (WIDTH, EMBED_DIM), jnp.float32),
        "logit_scale": jnp.array([math.log(1.0 / 0.07)], jnp.float32),
        "layers": [],
    }
    for i in range(LAYERS):
        lk = jax.random.split(ks[3 + i], 4)
        params["layers"].append({
            "ln1_g": jnp.ones((WIDTH,), jnp.float32),
            "ln1_b": jnp.zeros((WIDTH,), jnp.float32),
            "w_qkv": 0.02 * jax.random.normal(lk[0], (WIDTH, 3 * WIDTH), jnp.float32),
            "b_qkv": jnp.zeros((3 * WIDTH,), jnp.float32),
            "w_out": 0.02 * jax.random.normal(lk[1], (WIDTH, WIDTH), jnp.float32),
            "b_out": jnp.zeros((WIDTH,), jnp.float32),
            "ln2_g": jnp.ones((WIDTH,), jnp.float32),
            "ln2_b": jnp.zeros((WIDTH,), jnp.float32),
            "w_fc": 0.02 * jax.random.normal(lk[2], (WIDTH, 4 * WIDTH), jnp.float32),
            "b_fc": jnp.zeros((4 * WIDTH,), jnp.float32),
            "w_proj": 0.02 * jax.random.normal(lk[3], (4 * WIDTH, WIDTH), jnp.float32),
            "b_proj": jnp.zeros((WIDTH,), jnp.float32),
        })
    return params


def _build_attn_mask(s):
    # CLIP causal mask: 0 on/below diagonal, -inf above.
    row = jnp.arange(s)[:, None]
    col = jnp.arange(s)[None, :]
    return jnp.where(col <= row, 0.0, -jnp.inf).astype(jnp.float32)


def simple_tokenize(texts, context_length=CONTEXT, vocab_size=VOCAB_SIZE):
    # TODO(synk): the real CLIP BPE / HF tokenizer is host-side string processing with no
    # Pallas equivalent; deterministic synthetic ids preserve the [SOT ... EOT pad] layout
    # (EOT = vocab_size-1 is the max id, so argmax(dim=-1) locates it, as in CLIP).
    sot, eot = 1, vocab_size - 1
    out = []
    for t in texts:
        body = [2 + (ord(c) % (vocab_size - 4)) for c in t][: context_length - 2]
        toks = [sot] + body + [eot]
        toks = toks + [0] * (context_length - len(toks))
        out.append(toks)
    return jnp.array(out, dtype=jnp.int32)


# ----------------------------- module port -----------------------------------
class PredefinedOvClassifierPallas:
    def __init__(self, key, cache_feature=True, templates=("a photo of {}",),
                 vocabulary=None, dataset_name=None):
        assert vocabulary is None or dataset_name is None
        self.params = _init_params(key)
        self.attn_mask = _build_attn_mask(CONTEXT)
        self.templates = templates
        self.cache_feature = cache_feature
        if self.cache_feature:
            self.cache = {}
        self.vocabulary = vocabulary
        self.dataset_name = dataset_name
        # prepared classifier per-vocabulary: transposed [Dp, Cp], pre-scaled by
        # exp(logit_scale), zero-padded to MXU/lane-friendly shapes, bf16.
        self._prepared = {}

    # --- encode_text: transformer body in plain JAX, EOT-row gather in JAX (LayerNorm
    #     commutes with row selection), head (ln_final + projection + normalize) in Pallas.
    def encode_text(self, text, normalize=False):
        p = self.params
        x = p["token_embedding"][text] + p["positional_embedding"][None]   # (B, S, W)
        for lp in p["layers"]:
            x = _block(x, lp, self.attn_mask, HEADS)
        eot_idx = jnp.argmax(text, axis=-1)                                # (B,)
        x_eot = x[jnp.arange(text.shape[0]), eot_idx]                      # (B, W)
        return text_head_call(x_eot, p["ln_final_g"], p["ln_final_b"],
                              p["text_projection"], normalize=normalize)

    def get_classifier(self, category_names):
        bucket = []
        for template in self.templates:
            toks = simple_tokenize([template.format(n) for n in category_names])
            bucket.append(self.encode_text(toks, normalize=True))          # (C, D)
        stacked = jnp.stack(bucket)                                        # (T, C, D)
        return template_mean_call(stacked)                                 # mean + renorm (Pallas)

    def get_classifier_by_vocabulary(self, vocabulary):
        if self.cache_feature:
            new_words = [w for w in vocabulary if w not in self.cache]
            if new_words:
                embs = self.get_classifier(new_words)
                self.cache.update({w: embs[i] for i, w in enumerate(new_words)})
            return jnp.stack([self.cache[w] for w in vocabulary])
        return self.get_classifier(vocabulary)

    def _prepare_classifier(self, vocabulary):
        """[C, D] f32 -> pre-scaled, transposed, padded [Dp, Cp] bf16 (cached per vocab)."""
        key = tuple(vocabulary)
        if key not in self._prepared:
            w = self.get_classifier_by_vocabulary(list(vocabulary))        # (C, D) f32
            c, d = w.shape
            ls = jnp.exp(self.params["logit_scale"][0])                    # fold exp(scale) once
            w_dc = (w * ls).T                                              # (D, C)
            dp = _round_up(d, 128)                                         # MXU contraction depth
            cp = _round_up(c, TC_CLS)                                      # lane-dense output
            w_dc = jnp.pad(w_dc, ((0, dp - d), (0, cp - c))).astype(jnp.bfloat16)
            self._prepared[key] = (w_dc, c, d)
        return self._prepared[key]

    def __call__(self, feat, vocabulary=None, dataset_name=None):
        assert vocabulary is None or dataset_name is None
        if vocabulary is not None:
            vocab = vocabulary
        elif self.vocabulary is not None:
            vocab = self.vocabulary
        else:
            # TODO(synk): dataset-name -> labelset lookup needs an external label registry.
            raise ValueError("No vocabulary or dataset_name provided.")
        w_dc, c, d = self._prepare_classifier(vocab)
        dp = w_dc.shape[0]
        n = feat.shape[0]
        np_ = _round_up(max(n, 1), TN_CLS)
        feat_p = jnp.pad(feat.astype(jnp.float32), ((0, np_ - n), (0, dp - d)))
        logits = classify_call(feat_p, w_dc)
        return logits[:n, :c]


# ----------------------------- demo ------------------------------------------
if __name__ == "__main__":
    key = jax.random.PRNGKey(0)
    vocab_words = ["cat", "dog", "car", "tree", "person", "sky"]
    clf = PredefinedOvClassifierPallas(
        key, cache_feature=True,
        templates=("a photo of {}", "a picture of {}"),
        vocabulary=vocab_words)

    feat = jax.random.normal(jax.random.fold_in(key, 123), (8, EMBED_DIM), jnp.float32)

    logits = clf(feat)                        # uses cached-vocabulary path + Pallas kernels
    logits = jax.block_until_ready(logits)

    assert logits.shape == (8, len(vocab_words)), logits.shape
    assert bool(jnp.all(jnp.isfinite(logits)))
    print("KERNEL_OK")
</pallas_src>

<mosaic_0001>
module attributes {stable_mosaic.version = 11 : i64} {
  func.func @_text_head_kernel(%arg0: i32, %arg1: memref<128x64xf32, #tpu.memory_space<vmem>>, %arg2: memref<1x64xf32, #tpu.memory_space<vmem>>, %arg3: memref<1x64xf32, #tpu.memory_space<vmem>>, %arg4: memref<64x128xf32, #tpu.memory_space<vmem>>, %arg5: memref<128x128xf32, #tpu.memory_space<vmem>>) attributes {dimension_semantics = [#tpu.dimension_semantics<parallel>], iteration_bounds = array<i64: 1>, scalar_prefetch = 0 : i64, scratch_operands = 0 : i64, tpu.core_type = #tpu.core_type<tc>, window_params = [{transform_indices = @transform_0, window_bounds = array<i64: 128, 64>}, {pipeline_mode = #tpu.pipeline_mode<synchronous>, transform_indices = @transform_1, window_bounds = array<i64: 1, 64>}, {pipeline_mode = #tpu.pipeline_mode<synchronous>, transform_indices = @transform_2, window_bounds = array<i64: 1, 64>}, {pipeline_mode = #tpu.pipeline_mode<synchronous>, transform_indices = @transform_3, window_bounds = array<i64: 64, 128>}, {transform_indices = @transform_4, window_bounds = array<i64: 128, 128>}]} {
    %c0 = arith.constant 0 : index
    %c0_0 = arith.constant 0 : index
    %0 = vector.load %arg1[%c0, %c0_0] : memref<128x64xf32, #tpu.memory_space<vmem>>, vector<128x64xf32>
    %cst = arith.constant dense<0.000000e+00> : vector<128xf32>
    %1 = vector.multi_reduction <add>, %0, %cst [1] : vector<128x64xf32> to vector<128xf32>
    %2 = vector.shape_cast %1 : vector<128xf32> to vector<128x1xf32>
    %cst_1 = arith.constant 6.400000e+01 : f32
    %3 = vector.broadcast %cst_1 : f32 to vector<128x1xf32>
    %4 = arith.divf %2, %3 : vector<128x1xf32>
    %5 = vector.broadcast %4 : vector<128x1xf32> to vector<128x64xf32>
    %6 = arith.subf %0, %5 : vector<128x64xf32>
    %7 = arith.mulf %6, %6 : vector<128x64xf32>
    %cst_2 = arith.constant dense<0.000000e+00> : vector<128xf32>
    %8 = vector.multi_reduction <add>, %7, %cst_2 [1] : vector<128x64xf32> to vector<128xf32>
    %9 = vector.shape_cast %8 : vector<128xf32> to vector<128x1xf32>
    %cst_3 = arith.constant 6.400000e+01 : f32
    %10 = vector.broadcast %cst_3 : f32 to vector<128x1xf32>
    %11 = arith.divf %9, %10 : vector<128x1xf32>
    %12 = vector.broadcast %4 : vector<128x1xf32> to vector<128x64xf32>
    %13 = arith.subf %0, %12 : vector<128x64xf32>
    %cst_4 = arith.constant 9.99999974E-6 : f32
    %14 = vector.broadcast %cst_4 : f32 to vector<128x1xf32>
    %15 = arith.addf %11, %14 : vector<128x1xf32>
    %16 = math.rsqrt %15 : vector<128x1xf32>
    %17 = vector.broadcast %16 : vector<128x1xf32> to vector<128x64xf32>
    %18 = arith.mulf %13, %17 : vector<128x64xf32>
    %c0_5 = arith.constant 0 : index
    %c0_6 = arith.constant 0 : index
    %19 = vector.load %arg2[%c0_5, %c0_6] : memref<1x64xf32, #tpu.memory_space<vmem>>, vector<1x64xf32>
    %20 = vector.broadcast %19 : vector<1x64xf32> to vector<128x64xf32>
    %21 = arith.mulf %18, %20 : vector<128x64xf32>
    %c0_7 = arith.constant 0 : index
    %c0_8 = arith.constant 0 : index
    %22 = vector.load %arg3[%c0_7, %c0_8] : memref<1x64xf32, #tpu.memory_space<vmem>>, vector<1x64xf32>
    %23 = vector.broadcast %22 : vector<1x64xf32> to vector<128x64xf32>
    %24 = arith.addf %21, %23 : vector<128x64xf32>
    %c0_9 = arith.constant 0 : index
    %c0_10 = arith.constant 0 : index
    %25 = vector.load %arg4[%c0_9, %c0_10] : memref<64x128xf32, #tpu.memory_space<vmem>>, vector<64x128xf32>
    %cst_11 = arith.constant dense<0.000000e+00> : vector<128x128xf32>
    %26 = tpu.matmul %24, %25, %cst_11 {dimension_numbers = #tpu.dot_dimension_numbers<[1], [0], [0], [1], [0, 0, 1, 1], [], []>} : vector<128x64xf32>, vector<64x128xf32>, vector<128x128xf32> -> vector<128x128xf32>
    %27 = arith.mulf %26, %26 : vector<128x128xf32>
    %cst_12 = arith.constant dense<0.000000e+00> : vector<128xf32>
    %28 = vector.multi_reduction <add>, %27, %cst_12 [1] : vector<128x128xf32> to vector<128xf32>
    %29 = vector.shape_cast %28 : vector<128xf32> to vector<128x1xf32>
    %cst_13 = arith.constant 1.000000e-24 : f32
    %30 = vector.broadcast %cst_13 : f32 to vector<128x1xf32>
    %31 = arith.maximumf %29, %30 : vector<128x1xf32>
    %32 = math.rsqrt %31 : vector<128x1xf32>
    %33 = vector.broadcast %32 : vector<128x1xf32> to vector<128x128xf32>
    %34 = arith.mulf %26, %33 : vector<128x128xf32>
    %c0_14 = arith.constant 0 : index
    %c0_15 = arith.constant 0 : index
    %35 = vector.load %arg5[%c0_14, %c0_15] : memref<128x128xf32, #tpu.memory_space<vmem>>, vector<128x128xf32>
    tpu.vector_store %arg5[%c0_14, %c0_15], %34 {strides = array<i32>} : memref<128x128xf32, #tpu.memory_space<vmem>>, vector<128x128xf32>,
    return
  }
  func.func @transform_0(%arg0: i32) -> (i32, i32) {
    %c0_i32 = arith.constant 0 : i32
    %c0_i32_0 = arith.constant 0 : i32
    return %arg0, %c0_i32 : i32, i32
  }
  func.func @transform_1(%arg0: i32) -> (i32, i32) {
    %c0_i32 = arith.constant 0 : i32
    %c0_i32_0 = arith.constant 0 : i32
    %c0_i32_1 = arith.constant 0 : i32
    return %c0_i32, %c0_i32_0 : i32, i32
  }
  func.func @transform_2(%arg0: i32) -> (i32, i32) {
    %c0_i32 = arith.constant 0 : i32
    %c0_i32_0 = arith.constant 0 : i32
    %c0_i32_1 = arith.constant 0 : i32
    return %c0_i32, %c0_i32_0 : i32, i32
  }
  func.func @transform_3(%arg0: i32) -> (i32, i32) {
    %c0_i32 = arith.constant 0 : i32
    %c0_i32_0 = arith.constant 0 : i32
    %c0_i32_1 = arith.constant 0 : i32
    return %c0_i32, %c0_i32_0 : i32, i32
  }
  func.func @transform_4(%arg0: i32) -> (i32, i32) {
    %c0_i32 = arith.constant 0 : i32
    %c0_i32_0 = arith.constant 0 : i32
    return %arg0, %c0_i32 : i32, i32
  }
}

</mosaic_0001>

<bundles_post_ra>
// kernel: tpu_custom_call.1
= control target key start
LH: loop header
LB: loop body
LE: loop exit
PB: predicated region body
PF: predicated region fallthrough
CT: control target
= control target key end

     0   :  { %vm34_vm0 = vcmask 523264   ;;  %s1199_s0 = inlined_call_operand.vmem [shape: f32[128,64], index: 0, kind: input, shape index: {}]   ;;  %s1200_s1 = inlined_call_operand.vmem [shape: f32[1,64], index: 1, kind: input, shape index: {}]   ;;  %s1201_s2 = inlined_call_operand.vmem [shape: f32[1,64], index: 2, kind: input, shape index: {}]   ;;  %s1202_s3 = inlined_call_operand.vmem [shape: f32[64,128], index: 3, kind: input, shape index: {}]   ;;  %s1203_s4 = inlined_call_operand.hbm [shape: f32[128,128], index: 4, kind: output, shape index: {}]  }
   0x1   :  { %v18_v0 = vld [vmem:[%s1199_s0] sm:$0xff]  ;;  %v19_v1 = vld [vmem:[%s1199_s0 + $0x8] sm:$0xff]  ;;  %v20_v8 = vld [vmem:[%s1199_s0 + $0x10] sm:$0xff] }
   0x2   :  { %v26_v2 = vld [vmem:[%s1199_s0 + $0x40] sm:$0xff]  ;;  %v35_v3 = vsel %vm34_vm0, %v18_v0, 0.0  ;;  %v38_v4 = vsel %vm34_vm0, %v19_v1, 0.0  ;;  %v27_v5 = vld [vmem:[%s1199_s0 + $0x48] sm:$0xff]  ;;  %v28_v9 = vld [vmem:[%s1199_s0 + $0x50] sm:$0xff] }
   0x3   :  { %36 = vadd.xlane.f32.xlu0 %v35_v3  ;;  %39 = vadd.xlane.f32.xlu1 %v38_v4  ;;  %v59_v6 = vsel %vm34_vm0, %v26_v2, 0.0  ;;  %v62_v7 = vsel %vm34_vm0, %v27_v5, 0.0 }
   0x4   :  { %9 = vsyncpa [#allocation3], 0  ;;  %v41_v10 = vsel %vm34_vm0, %v20_v8, 0.0  ;;  %v65_v11 = vsel %vm34_vm0, %v28_v9, 0.0  ;;  %v861_v12 = vld [vmem:[%s1199_s0 + $0x18] sm:$0xff]  ;;  %v875_v16 = vld [vmem:[%s1199_s0 + $0x20] sm:$0xff] }
   0x5   :  { %v866_v13 = vld [vmem:[%s1199_s0 + $0x58] sm:$0xff]  ;;  %v44_v14 = vsel %vm34_vm0, %v861_v12, 0.0  ;;  %v880_v17 = vld [vmem:[%s1199_s0 + $0x60] sm:$0xff]  ;;  %v47_v18 = vsel %vm34_vm0, %v875_v16, 0.0  ;;  %v889_v20 = vld [vmem:[%s1199_s0 + $0x28] sm:$0xff] }
   0x6   :  { %v68_v15 = vsel %vm34_vm0, %v866_v13, 0.0  ;;  %v71_v19 = vsel %vm34_vm0, %v880_v17, 0.0  ;;  %v894_v21 = vld [vmem:[%s1199_s0 + $0x68] sm:$0xff]  ;;  %v50_v22 = vsel %vm34_vm0, %v889_v20, 0.0  ;;  %v903_v24 = vld [vmem:[%s1199_s0 + $0x30] sm:$0xff]  ;;  %v917_v28 = vld [vmem:[%s1199_s0 + $0x38] sm:$0xff] }
   0x7   :  { %60 = vadd.xlane.f32.xlu0 %v59_v6  ;;  %63 = vadd.xlane.f32.xlu1 %v62_v7  ;;  %v74_v23 = vsel %vm34_vm0, %v894_v21, 0.0  ;;  %v908_v25 = vld [vmem:[%s1199_s0 + $0x70] sm:$0xff]  ;;  %v53_v26 = vsel %vm34_vm0, %v903_v24, 0.0  ;;  %v922_v29 = vld [vmem:[%s1199_s0 + $0x78] sm:$0xff]  ;;  %v56_v30 = vsel %vm34_vm0, %v917_v28, 0.0 }
   0x8   :  { %v77_v27 = vsel %vm34_vm0, %v908_v25, 0.0  ;;  %v80_v31 = vsel %vm34_vm0, %v922_v29, 0.0 }
   0xb   :  { %42 = vadd.xlane.f32.xlu0 %v41_v10  ;;  %66 = vadd.xlane.f32.xlu1 %v65_v11 }
   0xf   :  { %45 = vadd.xlane.f32.xlu0 %v44_v14  ;;  %69 = vadd.xlane.f32.xlu1 %v68_v15 }
  0x13   :  { %48 = vadd.xlane.f32.xlu0 %v47_v18  ;;  %72 = vadd.xlane.f32.xlu1 %v71_v19 }
  0x17   :  { %51 = vadd.xlane.f32.xlu0 %v50_v22  ;;  %75 = vadd.xlane.f32.xlu1 %v74_v23 }
  0x1b   :  { %54 = vadd.xlane.f32.xlu0 %v53_v26  ;;  %78 = vadd.xlane.f32.xlu1 %v77_v27 }
  0x1f   :  { %57 = vadd.xlane.f32.xlu0 %v56_v30  ;;  %81 = vadd.xlane.f32.xlu1 %v80_v31 }
  0x8c   :  { %v37_v32 = vpop.xlane.xlu0 %36  ;;  %v40_v33 = vpop.xlane.xlu1 %39 }
  0x8d   :  { %v84_v34 = vmul.f32 0.015625, %v37_v32  ;;  %v85_v35 = vmul.f32 0.015625, %v40_v33 }
  0x8f   :  { %v928_v36 = vsub.f32 %v18_v0, %v84_v34  ;;  %v930_v37 = vsub.f32 %v19_v1, %v85_v35 }
  0x90   :  { %v61_v38 = vpop.xlane.xlu0 %60  ;;  %v64_v39 = vpop.xlane.xlu1 %63 }
  0x91   :  { %v92_v40 = vmul.f32 0.015625, %v61_v38  ;;  %v93_v41 = vmul.f32 0.015625, %v64_v39  ;;  %v116_v42 = vmul.f32 %v928_v36, %v928_v36  ;;  %v117_v43 = vmul.f32 %v930_v37, %v930_v37 }
  0x93   :  { %v936_v44 = vsub.f32 %v26_v2, %v92_v40  ;;  %v938_v45 = vsub.f32 %v27_v5, %v93_v41  ;;  %v132_v46 = vsel %vm34_vm0, %v116_v42, 0.0  ;;  %v135_v49 = vsel %vm34_vm0, %v117_v43, 0.0 }
  0x94   :  { %133 = vadd.xlane.f32.xlu0 %v132_v46  ;;  %v43_v47 = vpop.xlane.xlu0 %42  ;;  %v67_v48 = vpop.xlane.xlu1 %66 }
  0x95   :  { %v86_v50 = vmul.f32 0.015625, %v43_v47  ;;  %v94_v51 = vmul.f32 0.015625, %v67_v48  ;;  %v124_v52 = vmul.f32 %v936_v44, %v936_v44  ;;  %v125_v53 = vmul.f32 %v938_v45, %v938_v45 }
  0x97   :  { %v946_v54 = vsub.f32 %v20_v8, %v86_v50  ;;  %v948_v55 = vsub.f32 %v28_v9, %v94_v51  ;;  %v156_v56 = vsel %vm34_vm0, %v124_v52, 0.0  ;;  %v159_v59 = vsel %vm34_vm0, %v125_v53, 0.0  ;;  %v296_v50 = vld [vmem:[%s1202_s3 + $0x30] sm:$0xff] }
  0x98   :  { %136 = vadd.xlane.f32.xlu0 %v135_v49  ;;  %157 = vadd.xlane.f32.xlu1 %v156_v56  ;;  %v46_v57 = vpop.xlane.xlu0 %45  ;;  %v70_v58 = vpop.xlane.xlu1 %69  ;;  %v294_v56 = vld [vmem:[%s1202_s3 + $0x20] sm:$0xff] }
  0x99   :  { %v87_v60 = vmul.f32 0.015625, %v46_v57  ;;  %v95_v61 = vmul.f32 0.015625, %v70_v58  ;;  %v118_v62 = vmul.f32 %v946_v54, %v946_v54  ;;  %v126_v63 = vmul.f32 %v948_v55, %v948_v55  ;;  %v293_v58 = vld [vmem:[%s1202_s3 + $0x18] sm:$0xff] }
  0x9b   :  { %v957_v0 = vsub.f32 %v861_v12, %v87_v60  ;;  %v960_v1 = vsub.f32 %v866_v13, %v95_v61  ;;  %v138_v2 = vsel %vm34_vm0, %v118_v62, 0.0  ;;  %v162_v5 = vsel %vm34_vm0, %v126_v63, 0.0  ;;  %v291_v60 = vld [vmem:[%s1202_s3 + $0x8] sm:$0xff]  ;;  %v290_v61 = vld [vmem:[%s1202_s3] sm:$0xff] }
  0x9c   :  { %160 = vadd.xlane.f32.xlu1 %v159_v59  ;;  %139 = vadd.xlane.f32.xlu0 %v138_v2  ;;  %v49_v3 = vpop.xlane.xlu0 %48  ;;  %v73_v4 = vpop.xlane.xlu1 %72  ;;  %v292_v59 = vld [vmem:[%s1202_s3 + $0x10] sm:$0xff] }
  0x9d   :  { %v88_v6 = vmul.f32 0.015625, %v49_v3  ;;  %v96_v7 = vmul.f32 0.015625, %v73_v4  ;;  %v119_v8 = vmul.f32 %v957_v0, %v957_v0  ;;  %v127_v9 = vmul.f32 %v960_v1, %v960_v1 }
  0x9f   :  { %v969_v10 = vsub.f32 %v875_v16, %v88_v6  ;;  %v972_v11 = vsub.f32 %v880_v17, %v96_v7  ;;  %v141_v12 = vsel %vm34_vm0, %v119_v8, 0.0  ;;  %v165_v15 = vsel %vm34_vm0, %v127_v9, 0.0 }
  0xa0   :  { %163 = vadd.xlane.f32.xlu1 %v162_v5  ;;  %142 = vadd.xlane.f32.xlu0 %v141_v12  ;;  %v52_v13 = vpop.xlane.xlu0 %51  ;;  %v76_v14 = vpop.xlane.xlu1 %75 }
  0xa1   :  { %v89_v18 = vmul.f32 0.015625, %v52_v13  ;;  %v97_v19 = vmul.f32 0.015625, %v76_v14  ;;  %v120_v22 = vmul.f32 %v969_v10, %v969_v10  ;;  %v128_v16 = vmul.f32 %v972_v11, %v972_v11 }
  0xa3   :  { %v981_v23 = vsub.f32 %v889_v20, %v89_v18  ;;  %v984_v17 = vsub.f32 %v894_v21, %v97_v19  ;;  %v144_v26 = vsel %vm34_vm0, %v120_v22, 0.0  ;;  %v168_v31 = vsel %vm34_vm0, %v128_v16, 0.0 }
  0xa4   :  { %166 = vadd.xlane.f32.xlu1 %v165_v15  ;;  %145 = vadd.xlane.f32.xlu0 %v144_v26  ;;  %v55_v27 = vpop.xlane.xlu0 %54  ;;  %v79_v30 = vpop.xlane.xlu1 %78 }
  0xa5   :  { %v90_v32 = vmul.f32 0.015625, %v55_v27  ;;  %v98_v33 = vmul.f32 0.015625, %v79_v30  ;;  %v121_v34 = vmul.f32 %v981_v23, %v981_v23  ;;  %v129_v20 = vmul.f32 %v984_v17, %v984_v17 }
  0xa7   :  { %v993_v35 = vsub.f32 %v903_v24, %v90_v32  ;;  %v996_v21 = vsub.f32 %v908_v25, %v98_v33  ;;  %v147_v38 = vsel %vm34_vm0, %v121_v34, 0.0  ;;  %v171_v41 = vsel %vm34_vm0, %v129_v20, 0.0  ;;  %v297_v25 = vld [vmem:[%s1202_s3 + $0x38] sm:$0xff] }
  0xa8   :  { %169 = vadd.xlane.f32.xlu1 %v168_v31  ;;  %148 = vadd.xlane.f32.xlu0 %v147_v38  ;;  %v58_v39 = vpop.xlane.xlu0 %57  ;;  %v82_v40 = vpop.xlane.xlu1 %81  ;;  %v1045_v38 = vld [vmem:[%s1200_s1] ss:$0 sm:$0xff]  ;;  %s806_s1 = smov [#allocation2]  }
  0xa9   :  { %v91_v42 = vmul.f32 0.015625, %v58_v39  ;;  %v99_v43 = vmul.f32 0.015625, %v82_v40  ;;  %v122_v46 = vmul.f32 %v993_v35, %v993_v35  ;;  %v130_v24 = vmul.f32 %v996_v21, %v996_v21  ;;  %661 = vmatprep.subr.mxu0 %v297_v25  ;;  %701 = vmatprep.subr.mxu1 %v297_v25 }
  0xaa   :  { %662 = vmatpush3.msra.mxu0 %v297_v25  ;;  %709 = vmatpush3.msra.mxu1 %v297_v25 }
  0xab   :  { %v1008_v47 = vsub.f32 %v917_v28, %v91_v42  ;;  %v1011_v48 = vsub.f32 %v922_v29, %v99_v43  ;;  %v150_v49 = vsel %vm34_vm0, %v122_v46, 0.0  ;;  %v174_v51 = vsel %vm34_vm0, %v130_v24, 0.0  ;;  %663 = vmatprep.subr.mxu0 %v296_v50  ;;  %v295_v29 = vld [vmem:[%s1202_s3 + $0x28] sm:$0xff]  ;;  %702 = vmatprep.subr.mxu1 %v296_v50  ;;  %v1051_v46 = vld [vmem:[%s1201_s2] ss:$0 sm:$0xff]  ;;  %s608_s2 = sshll.u32 %s806_s1, 4  ;;  %s609_s2 = int_to_ptr.vmem [resolvable:$true] %s608_s2 }
  0xac   :  { %172 = vadd.xlane.f32.xlu1 %v171_v41  ;;  %151 = vadd.xlane.f32.xlu0 %v150_v49  ;;  %s784_s13 = scalar_lea.vmem %s609_s2, 2048  ;;  %p789_p1 = scmp.lt.s32.totalorder %s609_s2, %s609_s2 }
  0xad   :  { %v123_v52 = vmul.f32 %v1008_v47, %v1008_v47  ;;  %v131_v28 = vmul.f32 %v1011_v48, %v1011_v48  ;;  %664 = vmatpush3.msra.mxu0 %v296_v50  ;;  %710 = vmatpush3.msra.mxu1 %v296_v50  ;;  %p785_p0 = scmp.ne.s32.totalorder %s609_s2, %s784_s13  ;;  %p790_p2 = scmp.lt.s32.totalorder %s784_s13, %s784_s13 }
  0xae   :  { %665 = vmatprep.subr.mxu0 %v295_v29  ;;  %703 = vmatprep.subr.mxu1 %v295_v29 }
  0xaf   :  { %v153_v53 = vsel %vm34_vm0, %v123_v52, 0.0  ;;  %v177_v57 = vsel %vm34_vm0, %v131_v28, 0.0  ;;  %666 = vmatpush3.msra.mxu0 %v295_v29  ;;  %711 = vmatpush3.msra.mxu1 %v295_v29  ;;  %p791_p3 = por %p790_p2, %p789_p1 }
  0xb0   :  { %175 = vadd.xlane.f32.xlu1 %v174_v51  ;;  %154 = vadd.xlane.f32.xlu0 %v153_v53 }
  0xb1   :  { %667 = vmatprep.subr.mxu0 %v294_v56  ;;  %704 = vmatprep.subr.mxu1 %v294_v56  ;;  %p792_p4 = pnand %p791_p3, %p785_p0 }
  0xb2   :  { %668 = vmatpush3.msra.mxu0 %v294_v56  ;;  %712 = vmatpush3.msra.mxu1 %v294_v56 }
  0xb3   :  { %669 = vmatprep.subr.mxu0 %v293_v58  ;;  %705 = vmatprep.subr.mxu1 %v293_v58 }
  0xb4   :  { %178 = vadd.xlane.f32.xlu1 %v177_v57  ;;  %670 = vmatpush3.msra.mxu0 %v293_v58 }
  0xb5   :  { %671 = vmatprep.subr.mxu0 %v292_v59  ;;  %713 = vmatpush3.msra.mxu1 %v293_v58 }
  0xb6   :  { %672 = vmatpush3.msra.mxu0 %v292_v59  ;;  %706 = vmatprep.subr.mxu1 %v292_v59 }
  0xb7   :  { %673 = vmatprep.subr.mxu0 %v291_v60  ;;  %714 = vmatpush3.msra.mxu1 %v292_v59 }
  0xb8   :  { %674 = vmatpush3.msra.mxu0 %v291_v60  ;;  %707 = vmatprep.subr.mxu1 %v291_v60 }
  0xb9   :  { %675 = vmatprep.subr.mxu0 %v290_v61  ;;  %715 = vmatpush3.msra.mxu1 %v291_v60 }
  0xba   :  { %676 = vmatpush3.msra.mxu0 %v290_v61  ;;  %708 = vmatprep.subr.mxu1 %v290_v61 }
  0xbb   :  { %716 = vmatpush3.msra.mxu1 %v290_v61 }
 0x11d   :  { %v134_v62 = vpop.xlane.xlu0 %133 }
 0x11e   :  { %v180_v63 = vmul.f32 0.015625, %v134_v62 }
 0x120   :  { %v196_v2 = vadd.f32 1e-05, %v180_v63 }
 0x121   :  { %v158_v3 = vpop.xlane.xlu1 %157  ;;  %v137_v4 = vpop.xlane.xlu0 %136 }
 0x122   :  { %720 = vrsqrt.f32 %v196_v2  ;;  %v188_v5 = vmul.f32 0.015625, %v158_v3  ;;  %v181_v6 = vmul.f32 0.015625, %v137_v4 }
 0x124   :  { %v204_v7 = vadd.f32 1e-05, %v188_v5  ;;  %v197_v8 = vadd.f32 1e-05, %v181_v6 }
 0x125   :  { %v161_v9 = vpop.xlane.xlu1 %160  ;;  %v140_v12 = vpop.xlane.xlu0 %139 }
 0x126   :  { %722 = vrsqrt.f32 %v204_v7  ;;  %v189_v13 = vmul.f32 0.015625, %v161_v9  ;;  %v182_v14 = vmul.f32 0.015625, %v140_v12 }
 0x127   :  { %724 = vrsqrt.f32 %v197_v8 }
 0x128   :  { %v205_v15 = vadd.f32 1e-05, %v189_v13  ;;  %v198_v18 = vadd.f32 1e-05, %v182_v14 }
 0x129   :  { %v164_v19 = vpop.xlane.xlu1 %163  ;;  %v143_v22 = vpop.xlane.xlu0 %142 }
 0x12a   :  { %726 = vrsqrt.f32 %v205_v15  ;;  %v190_v16 = vmul.f32 0.015625, %v164_v19  ;;  %v183_v26 = vmul.f32 0.015625, %v143_v22 }
 0x12b   :  { %728 = vrsqrt.f32 %v198_v18 }
 0x12c   :  { %v206_v27 = vadd.f32 1e-05, %v190_v16  ;;  %v199_v30 = vadd.f32 1e-05, %v183_v26 }
 0x12d   :  { %v167_v31 = vpop.xlane.xlu1 %166  ;;  %v146_v32 = vpop.xlane.xlu0 %145 }
 0x12e   :  { %730 = vrsqrt.f32 %v206_v27  ;;  %v191_v33 = vmul.f32 0.015625, %v167_v31  ;;  %v184_v34 = vmul.f32 0.015625, %v146_v32 }
 0x12f   :  { %v721_v20 = vpop.eup %720  ;;  %732 = vrsqrt.f32 %v199_v30 }
 0x130   :  { %v207_v39 = vadd.f32 1e-05, %v191_v33  ;;  %v200_v40 = vadd.f32 1e-05, %v184_v34  ;;  %v228_v41 = vmul.f32 %v721_v20, %v928_v36 }
 0x131   :  { %v170_v42 = vpop.xlane.xlu1 %169  ;;  %v149_v43 = vpop.xlane.xlu0 %148 }
 0x132   :  { %734 = vrsqrt.f32 %v207_v39  ;;  %v192_v24 = vmul.f32 0.015625, %v170_v42  ;;  %v185_v25 = vmul.f32 0.015625, %v149_v43  ;;  %v251_v49 = vmul.f32 %v1045_v38, %v228_v41 }
 0x133   :  { %v723_v50 = vpop.eup %722  ;;  %736 = vrsqrt.f32 %v200_v40 }
 0x134   :  { %v725_v51 = vpop.eup %724  ;;  %v208_v52 = vadd.f32 1e-05, %v192_v24  ;;  %v201_v28 = vadd.f32 1e-05, %v185_v25  ;;  %v274_v29 = vadd.f32 %v1051_v46, %v251_v49  ;;  %v236_v36 = vmul.f32 %v723_v50, %v936_v44 }
 0x135   :  { %v173_v53 = vpop.xlane.xlu1 %172  ;;  %v152_v56 = vpop.xlane.xlu0 %151  ;;  %v229_v57 = vmul.f32 %v725_v51, %v930_v37 }
 0x136   :  { %738 = vrsqrt.f32 %v208_v52  ;;  %v193_v58 = vmul.f32 0.015625, %v173_v53  ;;  %v186_v59 = vmul.f32 0.015625, %v152_v56  ;;  %677 = vmatprep.mubr.msk.f32.mxu0 %vm34_vm0, %v274_v29  ;;  %v259_v60 = vmul.f32 %v1045_v38, %v236_v36 }
 0x137   :  { %v727_v61 = vpop.eup %726  ;;  %740 = vrsqrt.f32 %v201_v28  ;;  %v252_v62 = vmul.f32 %v1045_v38, %v229_v57 }
 0x138   :  { %v729_v63 = vpop.eup %728  ;;  %v209_v2 = vadd.f32 1e-05, %v193_v58  ;;  %v202_v3 = vadd.f32 1e-05, %v186_v59  ;;  %v282_v44 = vadd.f32 %v1051_v46, %v259_v60  ;;  %v237_v4 = vmul.f32 %v727_v61, %v938_v45 }
 0x139   :  { %v176_v5 = vpop.xlane.xlu1 %175  ;;  %v155_v37 = vpop.xlane.xlu0 %154  ;;  %v275_v6 = vadd.f32 %v1051_v46, %v252_v62  ;;  %v230_v7 = vmul.f32 %v729_v63, %v946_v54 }
 0x13a   :  { %742 = vrsqrt.f32 %v209_v2  ;;  %v194_v8 = vmul.f32 0.015625, %v176_v5  ;;  %v187_v9 = vmul.f32 0.015625, %v155_v37  ;;  %689 = vmatprep.mubr.msk.f32.mxu1 %vm34_vm0, %v282_v44  ;;  %v260_v12 = vmul.f32 %v1045_v38, %v237_v4 }
 0x13b   :  { %v731_v13 = vpop.eup %730  ;;  %744 = vrsqrt.f32 %v202_v3  ;;  %678 = vmatmul.mubr.msk.f32.vlgmr.msra.gmra.mxu0 %vm34_vm0, %v275_v6  ;;  %v253_v14 = vmul.f32 %v1045_v38, %v230_v7 }
 0x13c   :  { %v733_v45 = vpop.eup %732  ;;  %v210_v15 = vadd.f32 1e-05, %v194_v8  ;;  %v203_v18 = vadd.f32 1e-05, %v187_v9  ;;  %v283_v19 = vadd.f32 %v1051_v46, %v260_v12  ;;  %v238_v54 = vmul.f32 %v731_v13, %v948_v55 }
 0x13d   :  { %v179_v22 = vpop.xlane.xlu1 %178  ;;  %v276_v16 = vadd.f32 %v1051_v46, %v253_v14  ;;  %v231_v26 = vmul.f32 %v733_v45, %v957_v0 }
 0x13e   :  { %746 = vrsqrt.f32 %v210_v15  ;;  %v195_v27 = vmul.f32 0.015625, %v179_v22  ;;  %690 = vmatmul.mubr.msk.f32.vlgmr.msra.gmra.mxu1 %vm34_vm0, %v283_v19  ;;  %v261_v30 = vmul.f32 %v1045_v38, %v238_v54 }
 0x13f   :  { %v735_v31 = vpop.eup %734  ;;  %748 = vrsqrt.f32 %v203_v18  ;;  %680 = vmatprep.mubr.msk.f32.mxu0 %vm34_vm0, %v276_v16  ;;  %v254_v32 = vmul.f32 %v1045_v38, %v231_v26 }
 0x140   :  { %v737_v33 = vpop.eup %736  ;;  %v211_v34 = vadd.f32 1e-05, %v195_v27  ;;  %v284_v55 = vadd.f32 %v1051_v46, %v261_v30  ;;  %v239_v20 = vmul.f32 %v735_v31, %v960_v1 }
 0x141   :  { %v277_v0 = vadd.f32 %v1051_v46, %v254_v32  ;;  %v232_v39 = vmul.f32 %v737_v33, %v969_v10 }
 0x142   :  { %750 = vrsqrt.f32 %v211_v34  ;;  %692 = vmatprep.mubr.msk.f32.mxu1 %vm34_vm0, %v284_v55  ;;  %v262_v40 = vmul.f32 %v1045_v38, %v239_v20 }
 0x143   :  { %v739_v41 = vpop.eup %738  ;;  %681 = vmatmul.mubr.msk.f32.gmra.mxu0 %vm34_vm0, %v277_v0  ;;  %v255_v42 = vmul.f32 %v1045_v38, %v232_v39 }
 0x144   :  { %v741_v43 = vpop.eup %740  ;;  %v285_v24 = vadd.f32 %v1051_v46, %v262_v40  ;;  %v240_v25 = vmul.f32 %v739_v41, %v972_v11 }
 0x145   :  { %v278_v1 = vadd.f32 %v1051_v46, %v255_v42  ;;  %v233_v49 = vmul.f32 %v741_v43, %v981_v23 }
 0x146   :  { %693 = vmatmul.mubr.msk.f32.gmra.mxu1 %vm34_vm0, %v285_v24  ;;  %v263_v10 = vmul.f32 %v1045_v38, %v240_v25 }
 0x147   :  { %v743_v50 = vpop.eup %742  ;;  %683 = vmatprep.mubr.msk.f32.mxu0 %vm34_vm0, %v278_v1  ;;  %v256_v51 = vmul.f32 %v1045_v38, %v233_v49 }
 0x148   :  { %v745_v52 = vpop.eup %744  ;;  %v286_v28 = vadd.f32 %v1051_v46, %v263_v10  ;;  %v241_v29 = vmul.f32 %v743_v50, %v984_v17 }
 0x149   :  { %v279_v11 = vadd.f32 %v1051_v46, %v256_v51  ;;  %v234_v36 = vmul.f32 %v745_v52, %v993_v35 }
 0x14a   :  { %695 = vmatprep.mubr.msk.f32.mxu1 %vm34_vm0, %v286_v28  ;;  %v264_v23 = vmul.f32 %v1045_v38, %v241_v29 }
 0x14b   :  { %v747_v53 = vpop.eup %746  ;;  %684 = vmatmul.mubr.msk.f32.gmra.mxu0 %vm34_vm0, %v279_v11  ;;  %v257_v56 = vmul.f32 %v1045_v38, %v234_v36 }
 0x14c   :  { %v749_v57 = vpop.eup %748  ;;  %v287_v58 = vadd.f32 %v1051_v46, %v264_v23  ;;  %v242_v59 = vmul.f32 %v747_v53, %v996_v21 }
 0x14d   :  { %v280_v17 = vadd.f32 %v1051_v46, %v257_v56  ;;  %v235_v60 = vmul.f32 %v749_v57, %v1008_v47 }
 0x14e   :  { %696 = vmatmul.mubr.msk.f32.gmra.mxu1 %vm34_vm0, %v287_v58  ;;  %v265_v35 = vmul.f32 %v1045_v38, %v242_v59 }
 0x14f   :  { %v751_v61 = vpop.eup %750  ;;  %686 = vmatprep.mubr.msk.f32.mxu0 %vm34_vm0, %v280_v17  ;;  %v258_v62 = vmul.f32 %v1045_v38, %v235_v60 }
 0x150   :  { %v288_v63 = vadd.f32 %v1051_v46, %v265_v35  ;;  %v243_v2 = vmul.f32 %v751_v61, %v1011_v48 }
 0x151   :  { %v281_v3 = vadd.f32 %v1051_v46, %v258_v62 }
 0x152   :  { %698 = vmatprep.mubr.msk.f32.mxu1 %vm34_vm0, %v288_v63  ;;  %v266_v21 = vmul.f32 %v1045_v38, %v243_v2 }
 0x153   :  { %687 = vmatmul.mubr.msk.f32.gmra.mxu0 %vm34_vm0, %v281_v3 }
 0x154   :  { %v289_v47 = vadd.f32 %v1051_v46, %v266_v21 }
 0x156   :  { %699 = vmatmul.mubr.msk.f32.gmra.mxu1 %vm34_vm0, %v289_v47 }
 0x1fb   :  { %v1116_v44 = vpop.f32.mrf.mxu0 }
 0x1fc   :  { %v492_v4 = vmul.f32 %v1116_v44, %v1116_v44 }
 0x1fd   :  { %v1120_v5 = vpop.f32.mrf.mxu0 }
 0x1fe   :  { %509 = vadd.xlane.f32.xlu1 %v492_v4  ;;  %v1122_v48 = vpop.f32.mrf.mxu1  ;;  %v491_v37 = vmul.f32 %v1120_v5, %v1120_v5 }
 0x1ff   :  { %v500_v38 = vmul.f32 %v1122_v48, %v1122_v48 }
 0x200   :  { %507 = vadd.xlane.f32.xlu0 %v491_v37  ;;  %v1128_v46 = vpop.f32.mrf.mxu1 }
 0x201   :  { %v499_v6 = vmul.f32 %v1128_v46, %v1128_v46 }
 0x202   :  { %525 = vadd.xlane.f32.xlu1 %v500_v38 }
 0x203   :  { %v1132_v7 = vpop.f32.mrf.mxu0 }
 0x204   :  { %523 = vadd.xlane.f32.xlu0 %v499_v6  ;;  %v494_v8 = vmul.f32 %v1132_v7, %v1132_v7 }
 0x205   :  { %v1136_v9 = vpop.f32.mrf.mxu0 }
 0x206   :  { %513 = vadd.xlane.f32.xlu1 %v494_v8  ;;  %v1138_v12 = vpop.f32.mrf.mxu1  ;;  %v493_v13 = vmul.f32 %v1136_v9, %v1136_v9 }
 0x207   :  { %v502_v14 = vmul.f32 %v1138_v12, %v1138_v12 }
 0x208   :  { %511 = vadd.xlane.f32.xlu0 %v493_v13  ;;  %v1144_v45 = vpop.f32.mrf.mxu1 }
 0x209   :  { %v501_v15 = vmul.f32 %v1144_v45, %v1144_v45 }
 0x20a   :  { %529 = vadd.xlane.f32.xlu1 %v502_v14 }
 0x20b   :  { %v1148_v18 = vpop.f32.mrf.mxu0 }
 0x20c   :  { %527 = vadd.xlane.f32.xlu0 %v501_v15  ;;  %v496_v19 = vmul.f32 %v1148_v18, %v1148_v18 }
 0x20d   :  { %v1152_v54 = vpop.f32.mrf.mxu0 }
 0x20e   :  { %517 = vadd.xlane.f32.xlu1 %v496_v19  ;;  %v1154_v22 = vpop.f32.mrf.mxu1  ;;  %v495_v16 = vmul.f32 %v1152_v54, %v1152_v54 }
 0x20f   :  { %v504_v26 = vmul.f32 %v1154_v22, %v1154_v22 }
 0x210   :  { %515 = vadd.xlane.f32.xlu0 %v495_v16  ;;  %v1160_v27 = vpop.f32.mrf.mxu1 }
 0x211   :  { %v503_v30 = vmul.f32 %v1160_v27, %v1160_v27 }
 0x212   :  { %533 = vadd.xlane.f32.xlu1 %v504_v26 }
 0x213   :  { %v1164_v31 = vpop.f32.mrf.mxu0 }
 0x214   :  { %531 = vadd.xlane.f32.xlu0 %v503_v30  ;;  %v498_v32 = vmul.f32 %v1164_v31, %v1164_v31 }
 0x215   :  { %v1168_v33 = vpop.f32.mrf.mxu0 }
 0x216   :  { %v497_v34 = vmul.f32 %v1168_v33, %v1168_v33  ;;  %521 = vadd.xlane.f32.xlu1 %v498_v32  ;;  %v1172_v55 = vpop.f32.mrf.mxu1 }
 0x217   :  { %v506_v20 = vmul.f32 %v1172_v55, %v1172_v55 }
 0x218   :  { %519 = vadd.xlane.f32.xlu0 %v497_v34  ;;  %v1176_v0 = vpop.f32.mrf.mxu1 }
 0x219   :  { %v505_v39 = vmul.f32 %v1176_v0, %v1176_v0 }
 0x21a   :  { %537 = vadd.xlane.f32.xlu1 %v506_v20 }
 0x21c   :  { %535 = vadd.xlane.f32.xlu0 %v505_v39 }
 0x287   :  { %v510_v40 = vpop.xlane.xlu1 %509 }
 0x288   :  { %v540_v41 = vmax.f32 %v510_v40, 1e-24 }
 0x289   :  { %v508_v42 = vpop.xlane.xlu0 %507 }
 0x28a   :  { %752 = vrsqrt.f32 %v540_v41  ;;  %v539_v43 = vmax.f32 %v508_v42, 1e-24 }
 0x28b   :  { %v526_v24 = vpop.xlane.xlu1 %525 }
 0x28c   :  { %754 = vrsqrt.f32 %v539_v43  ;;  %v548_v25 = vmax.f32 %v526_v24, 1e-24 }
 0x28d   :  { %v524_v1 = vpop.xlane.xlu0 %523 }
 0x28e   :  { %756 = vrsqrt.f32 %v548_v25  ;;  %v547_v49 = vmax.f32 %v524_v1, 1e-24 }
 0x28f   :  { %v514_v10 = vpop.xlane.xlu1 %513 }
 0x290   :  { %758 = vrsqrt.f32 %v547_v49  ;;  %v542_v50 = vmax.f32 %v514_v10, 1e-24 }
 0x291   :  { %v512_v51 = vpop.xlane.xlu0 %511 }
 0x292   :  { %760 = vrsqrt.f32 %v542_v50  ;;  %v541_v52 = vmax.f32 %v512_v51, 1e-24 }
 0x293   :  { %v530_v28 = vpop.xlane.xlu1 %529 }
 0x294   :  { %762 = vrsqrt.f32 %v541_v52  ;;  %v550_v29 = vmax.f32 %v530_v28, 1e-24 }
 0x295   :  { %v528_v11 = vpop.xlane.xlu0 %527 }
 0x296   :  { %764 = vrsqrt.f32 %v550_v29  ;;  %v549_v36 = vmax.f32 %v528_v11, 1e-24 }
 0x297   :  { %v753_v23 = vpop.eup %752  ;;  %v518_v53 = vpop.xlane.xlu1 %517 }
 0x298   :  { %v572_v56 = vmul.f32 %v753_v23, %v1116_v44  ;;  %766 = vrsqrt.f32 %v549_v36  ;;  %v544_v57 = vmax.f32 %v518_v53, 1e-24 }
 0x299   :  { %v755_v58 = vpop.eup %754  ;;  %v516_v59 = vpop.xlane.xlu0 %515 }
 0x29a   :  { %588 = vst [vmem:[#allocation2 + $0x8] sm:$0xff] %v572_v56  ;;  %v571_v17 = vmul.f32 %v755_v58, %v1120_v5  ;;  %768 = vrsqrt.f32 %v544_v57  ;;  %v543_v60 = vmax.f32 %v516_v59, 1e-24 }
 0x29b   :  { %v757_v35 = vpop.eup %756  ;;  %v534_v61 = vpop.xlane.xlu1 %533 }
 0x29c   :  { %587 = vst [vmem:[#allocation2] sm:$0xff] %v571_v17  ;;  %v580_v62 = vmul.f32 %v757_v35, %v1122_v48  ;;  %770 = vrsqrt.f32 %v543_v60  ;;  %v552_v63 = vmax.f32 %v534_v61, 1e-24 }
 0x29d   :  { %v759_v2 = vpop.eup %758  ;;  %v532_v3 = vpop.xlane.xlu0 %531 }
 0x29e   :  { %596 = vst [vmem:[#allocation2 + $0x48] sm:$0xff] %v580_v62  ;;  %v579_v21 = vmul.f32 %v759_v2, %v1128_v46  ;;  %772 = vrsqrt.f32 %v552_v63  ;;  %v551_v47 = vmax.f32 %v532_v3, 1e-24 }
 0x29f   :  { %v761_v44 = vpop.eup %760  ;;  %v522_v4 = vpop.xlane.xlu1 %521 }
 0x2a0   :  { %595 = vst [vmem:[#allocation2 + $0x40] sm:$0xff] %v579_v21  ;;  %v574_v5 = vmul.f32 %v761_v44, %v1132_v7  ;;  %774 = vrsqrt.f32 %v551_v47  ;;  %v546_v37 = vmax.f32 %v522_v4, 1e-24 }
 0x2a1   :  { %v763_v38 = vpop.eup %762  ;;  %v520_v6 = vpop.xlane.xlu0 %519 }
 0x2a2   :  { %590 = vst [vmem:[#allocation2 + $0x18] sm:$0xff] %v574_v5  ;;  %v573_v48 = vmul.f32 %v763_v38, %v1136_v9  ;;  %776 = vrsqrt.f32 %v546_v37  ;;  %v545_v8 = vmax.f32 %v520_v6, 1e-24 }
 0x2a3   :  { %v765_v13 = vpop.eup %764  ;;  %v538_v14 = vpop.xlane.xlu1 %537 }
 0x2a4   :  { %589 = vst [vmem:[#allocation2 + $0x10] sm:$0xff] %v573_v48  ;;  %v582_v46 = vmul.f32 %v765_v13, %v1138_v12  ;;  %778 = vrsqrt.f32 %v545_v8  ;;  %v554_v15 = vmax.f32 %v538_v14, 1e-24 }
 0x2a5   :  { %v767_v19 = vpop.eup %766  ;;  %v536_v16 = vpop.xlane.xlu0 %535 }
 0x2a6   :  { %598 = vst [vmem:[#allocation2 + $0x58] sm:$0xff] %v582_v46  ;;  %v581_v7 = vmul.f32 %v767_v19, %v1144_v45  ;;  %780 = vrsqrt.f32 %v554_v15  ;;  %v553_v26 = vmax.f32 %v536_v16, 1e-24 }
 0x2a7   :  { %v769_v30 = vpop.eup %768 }
 0x2a8   :  { %597 = vst [vmem:[#allocation2 + $0x50] sm:$0xff] %v581_v7  ;;  %v576_v9 = vmul.f32 %v769_v30, %v1148_v18  ;;  %782 = vrsqrt.f32 %v553_v26 }
 0x2a9   :  { %v771_v32 = vpop.eup %770 }
 0x2aa   :  { %592 = vst [vmem:[#allocation2 + $0x28] sm:$0xff] %v576_v9  ;;  %v575_v34 = vmul.f32 %v771_v32, %v1152_v54 }
 0x2ab   :  { %v773_v20 = vpop.eup %772 }
 0x2ac   :  { %591 = vst [vmem:[#allocation2 + $0x20] sm:$0xff] %v575_v34  ;;  %v584_v12 = vmul.f32 %v773_v20, %v1154_v22 }
 0x2ad   :  { %v775_v39 = vpop.eup %774 }
 0x2ae   :  { %600 = vst [vmem:[#allocation2 + $0x68] sm:$0xff] %v584_v12  ;;  %v583_v40 = vmul.f32 %v775_v39, %v1160_v27 }
 0x2af   :  { %v777_v45 = vpop.eup %776 }
 0x2b0   :  { %599 = vst [vmem:[#allocation2 + $0x60] sm:$0xff] %v583_v40  ;;  %v578_v41 = vmul.f32 %v777_v45, %v1164_v31 }
 0x2b1   :  { %v779_v42 = vpop.eup %778 }
 0x2b2   :  { %594 = vst [vmem:[#allocation2 + $0x38] sm:$0xff] %v578_v41  ;;  %v577_v18 = vmul.f32 %v779_v42, %v1168_v33 }
 0x2b3   :  { %v781_v43 = vpop.eup %780 }
 0x2b4   :  { %593 = vst [vmem:[#allocation2 + $0x30] sm:$0xff] %v577_v18  ;;  %v586_v54 = vmul.f32 %v781_v43, %v1172_v55 }
 0x2b5   :  { %v783_v24 = vpop.eup %782 }
 0x2b6   :  { %602 = vst [vmem:[#allocation2 + $0x78] sm:$0xff] %v586_v54  ;;  %v585_v22 = vmul.f32 %v783_v24, %v1176_v0 }
 0x2b8   :  { %601 = vst [vmem:[#allocation2 + $0x70] sm:$0xff] %v585_v22 }
 0x2b9   :  { %795 = shalt.err (!%p792_p4)
}
 0x2ba   :  { %s807_s14 = smov 128   ;;  %s808_s15 = smov 8  }
 0x2bb   :  { %614 = dma.vmem_to_hbm [thread:$0]  %s609_s2, 2048, %s1203_s4, [#allocation3], %s807_s14, %s807_s14, %s808_s15  }
 0x2bc   :  { %804 = dma.done.wait [#allocation3], 2048  }
 0x2bd   :  { %805 = vsyncadd [#allocation3], 4294965248 }
 0x2be   :  { %618 = vsyncpa [#allocation3], 1 }

</bundles_post_ra>
